<compile_context>
chip_gen: v7x
topology: tpu7x:2x2x1
jax: 0.10.0
libtpu: 0.0.40
codegen_flags: <defaults>
</compile_context>

<pallas_src>
import functools

import jax
import jax.numpy as jnp
from jax.experimental import pallas as pl
from jax.experimental.pallas import tpu as pltpu

EPS = 1e-4


def _dice_kernel(x_ref, t_ref, o_ref, acc_ref, *, seq_len):
    # x_ref:   (TILE_N, C, TILE_L) logits (any float dtype)
    # t_ref:   (TILE_N, 1, TILE_L) int32 labels (lane-dense)
    # o_ref:   (TILE_N, 1)         per-sample loss, resident across L axis
    # acc_ref: (TILE_N, TILE_L)    lane-shaped intersection accumulator
    l_idx = pl.program_id(1)

    @pl.when(l_idx == 0)
    def _init():
        acc_ref[...] = jnp.zeros_like(acc_ref)

    x = x_ref[...].astype(jnp.float32)            # (TN, C, TL)
    t = t_ref[...]                                # (TN, 1, TL) int32

    # Numerically-stable softmax pieces over the class (sublane) axis.
    m = jnp.max(x, axis=1, keepdims=True)         # (TN, 1, TL)
    e = jnp.exp(x - m)                            # (TN, C, TL)
    denom = jnp.sum(e, axis=1)                    # (TN, TL)

    # One-hot via iota-compare on the class axis; select target-class exponent.
    classes = jax.lax.broadcasted_iota(jnp.int32, x.shape, 1)
    tgt_e = jnp.sum(jnp.where(classes == t, e, 0.0), axis=1)   # (TN, TL)

    # softmax(target class) = tgt_e / denom; one reciprocal per position.
    acc_ref[...] += tgt_e * pl.reciprocal(denom, approx=False)

    @pl.when(l_idx == pl.num_programs(1) - 1)
    def _finalize():
        inter = jnp.sum(acc_ref[...], axis=1, keepdims=True)   # (TN, 1)
        # cardinality == 2 * L exactly (softmax rows and one-hot rows sum to 1)
        dice = 2.0 * inter / (2.0 * seq_len + EPS)
        o_ref[...] = (1.0 - dice).astype(o_ref.dtype)


def _pick_tile(dim, candidates):
    for c in candidates:
        if dim % c == 0:
            return c
    return dim  # fall back to the full (untiled) dimension


def dice_loss(logits_ncl, target_nl):
    """logits_ncl: (N, C, L) float logits, target_nl: (N, L) ints -> scalar loss."""
    N, C, L = logits_ncl.shape
    tile_n = _pick_tile(N, (8,))
    tile_l = _pick_tile(L, (1024, 512, 256, 128))   # lane-dense, multiple of 128
    grid = (N // tile_n, L // tile_l)

    # Lane-dense int32 targets: (N, 1, L) so L maps to lanes.
    t = target_nl.astype(jnp.int32).reshape(N, 1, L)

    per_sample = pl.pallas_call(
        functools.partial(_dice_kernel, seq_len=L),
        out_shape=jax.ShapeDtypeStruct((N, 1), jnp.float32),
        grid=grid,
        in_specs=[
            pl.BlockSpec((tile_n, C, tile_l), lambda n, l: (n, 0, l)),
            pl.BlockSpec((tile_n, 1, tile_l), lambda n, l: (n, 0, l)),
        ],
        out_specs=pl.BlockSpec((tile_n, 1), lambda n, l: (n, 0)),
        scratch_shapes=[pltpu.VMEM((tile_n, tile_l), jnp.float32)],
        compiler_params=pltpu.CompilerParams(
            dimension_semantics=("parallel", "arbitrary")),
    )(logits_ncl, t)

    return jnp.mean(per_sample)


def dice_loss_ref(logits_ncl, target_nl):
    """Pure-JAX reference mirroring the PyTorch module."""
    C = logits_ncl.shape[1]
    soft = jax.nn.softmax(logits_ncl.astype(jnp.float32), axis=1)
    soft = jnp.swapaxes(soft, 1, 2)                              # (N, L, C)
    onehot = jax.nn.one_hot(target_nl, C, dtype=jnp.float32)     # (N, L, C)
    inter = jnp.sum(soft * onehot, axis=(1, 2))
    card = jnp.sum(soft + onehot, axis=(1, 2))
    dice = 2.0 * inter / (card + EPS)
    return jnp.mean(1.0 - dice)


if __name__ == "__main__":
    key = jax.random.PRNGKey(0)

    # Case 1: small shape from the module spec (batch=2, channels=4, length=16).
    k1, k2, k3, k4 = jax.random.split(key, 4)
    N, C, L = 2, 4, 16
    logits = jax.random.normal(k1, (N, C, L), dtype=jnp.float32)
    target = jax.random.randint(k2, (N, L), 0, C, dtype=jnp.int32)

    loss = dice_loss(logits, target)
    jax.block_until_ready(loss)
    ref = dice_loss_ref(logits, target)
    assert jnp.allclose(loss, ref, atol=1e-5, rtol=1e-5), (loss, ref)

    # Case 2: exercise the tiled/accumulating path (multiple L blocks).
    N2, C2, L2 = 8, 4, 384
    logits2 = jax.random.normal(k3, (N2, C2, L2), dtype=jnp.float32)
    target2 = jax.random.randint(k4, (N2, L2), 0, C2, dtype=jnp.int32)

    loss2 = dice_loss(logits2, target2)
    jax.block_until_ready(loss2)
    ref2 = dice_loss_ref(logits2, target2)
    assert jnp.allclose(loss2, ref2, atol=1e-5, rtol=1e-5), (loss2, ref2)

    print("KERNEL_OK")
</pallas_src>

<mosaic_0001>
module attributes {stable_mosaic.version = 11 : i64} {
  func.func @_dice_kernel(%arg0: i32, %arg1: i32, %arg2: memref<2x4x16xf32, #tpu.memory_space<vmem>>, %arg3: memref<2x1x16xi32, #tpu.memory_space<vmem>>, %arg4: memref<2x1xf32, #tpu.memory_space<vmem>>, %arg5: memref<2x16xf32, #tpu.memory_space<vmem>>) attributes {dimension_semantics = [#tpu.dimension_semantics<parallel>, #tpu.dimension_semantics<arbitrary>], iteration_bounds = array<i64: 1, 1>, scalar_prefetch = 0 : i64, scratch_operands = 1 : i64, tpu.core_type = #tpu.core_type<tc>, window_params = [{transform_indices = @transform_0, window_bounds = array<i64: 2, 4, 16>}, {transform_indices = @transform_1, window_bounds = array<i64: 2, 1, 16>}, {transform_indices = @transform_2, window_bounds = array<i64: 2, 1>}]} {
    %c0_i32 = arith.constant 0 : i32
    %0 = arith.cmpi eq, %arg1, %c0_i32 : i32
    %1 = arith.extui %0 : i1 to i32
    %c0_i32_0 = arith.constant 0 : i32
    %2 = arith.cmpi ne, %1, %c0_i32_0 : i32
    scf.if %2 {
      %cst_15 = arith.constant 0.000000e+00 : f32
      %25 = vector.broadcast %cst_15 : f32 to vector<2x16xf32>
      %c0_16 = arith.constant 0 : index
      %c0_17 = arith.constant 0 : index
      %26 = vector.load %arg5[%c0_16, %c0_17] : memref<2x16xf32, #tpu.memory_space<vmem>>, vector<2x16xf32>
      tpu.vector_store %arg5[%c0_16, %c0_17], %25 {strides = array<i32>} : memref<2x16xf32, #tpu.memory_space<vmem>>, vector<2x16xf32>,
    } else {
    }
    %c0 = arith.constant 0 : index
    %c0_1 = arith.constant 0 : index
    %c0_2 = arith.constant 0 : index
    %3 = vector.load %arg2[%c0, %c0_1, %c0_2] : memref<2x4x16xf32, #tpu.memory_space<vmem>>, vector<2x4x16xf32>
    %c0_3 = arith.constant 0 : index
    %c0_4 = arith.constant 0 : index
    %c0_5 = arith.constant 0 : index
    %4 = vector.load %arg3[%c0_3, %c0_4, %c0_5] : memref<2x1x16xi32, #tpu.memory_space<vmem>>, vector<2x1x16xi32>
    %cst = arith.constant dense<0xFF800000> : vector<2x16xf32>
    %5 = vector.multi_reduction <maximumf>, %3, %cst [1] : vector<2x4x16xf32> to vector<2x16xf32>
    %6 = vector.shape_cast %5 : vector<2x16xf32> to vector<2x1x16xf32>
    %7 = vector.broadcast %6 : vector<2x1x16xf32> to vector<2x4x16xf32>
    %8 = arith.subf %3, %7 : vector<2x4x16xf32>
    %9 = math.exp %8 : vector<2x4x16xf32>
    %cst_6 = arith.constant dense<0.000000e+00> : vector<2x16xf32>
    %10 = vector.multi_reduction <add>, %9, %cst_6 [1] : vector<2x4x16xf32> to vector<2x16xf32>
    %11 = tpu.iota {dimensions = array<i32: 1>} : vector<2x4x16xi32>
    %12 = vector.broadcast %4 : vector<2x1x16xi32> to vector<2x4x16xi32>
    %13 = arith.cmpi eq, %11, %12 : vector<2x4x16xi32>
    %cst_7 = arith.constant 0.000000e+00 : f32
    %14 = vector.broadcast %cst_7 : f32 to vector<2x4x16xf32>
    %15 = arith.select %13, %9, %14 : vector<2x4x16xi1>, vector<2x4x16xf32>
    %cst_8 = arith.constant dense<0.000000e+00> : vector<2x16xf32>
    %16 = vector.multi_reduction <add>, %15, %cst_8 [1] : vector<2x4x16xf32> to vector<2x16xf32>
    %c0_9 = arith.constant 0 : index
    %c0_10 = arith.constant 0 : index
    %17 = vector.load %arg5[%c0_9, %c0_10] : memref<2x16xf32, #tpu.memory_space<vmem>>, vector<2x16xf32>
    %18 = tpu.reciprocal %10 : vector<2x16xf32> -> vector<2x16xf32>
    %19 = arith.mulf %16, %18 : vector<2x16xf32>
    %20 = arith.addf %17, %19 : vector<2x16xf32>
    %c0_11 = arith.constant 0 : index
    %c0_12 = arith.constant 0 : index
    %21 = vector.load %arg5[%c0_11, %c0_12] : memref<2x16xf32, #tpu.memory_space<vmem>>, vector<2x16xf32>
    tpu.vector_store %arg5[%c0_11, %c0_12], %20 {strides = array<i32>} : memref<2x16xf32, #tpu.memory_space<vmem>>, vector<2x16xf32>,
    %c0_i32_13 = arith.constant 0 : i32
    %22 = arith.cmpi eq, %arg1, %c0_i32_13 : i32
    %23 = arith.extui %22 : i1 to i32
    %c0_i32_14 = arith.constant 0 : i32
    %24 = arith.cmpi ne, %23, %c0_i32_14 : i32
    scf.if %24 {
      %c0_15 = arith.constant 0 : index
      %c0_16 = arith.constant 0 : index
      %25 = vector.load %arg5[%c0_15, %c0_16] : memref<2x16xf32, #tpu.memory_space<vmem>>, vector<2x16xf32>
      %cst_17 = arith.constant dense<0.000000e+00> : vector<2xf32>
      %26 = vector.multi_reduction <add>, %25, %cst_17 [1] : vector<2x16xf32> to vector<2xf32>
      %27 = vector.shape_cast %26 : vector<2xf32> to vector<2x1xf32>
      %cst_18 = arith.constant 2.000000e+00 : f32
      %28 = vector.broadcast %cst_18 : f32 to vector<2x1xf32>
      %29 = arith.mulf %28, %27 : vector<2x1xf32>
      %cst_19 = arith.constant 3.200010e+01 : f32
      %30 = vector.broadcast %cst_19 : f32 to vector<2x1xf32>
      %31 = arith.divf %29, %30 : vector<2x1xf32>
      %cst_20 = arith.constant 1.000000e+00 : f32
      %32 = vector.broadcast %cst_20 : f32 to vector<2x1xf32>
      %33 = arith.subf %32, %31 : vector<2x1xf32>
      %c0_21 = arith.constant 0 : index
      %c0_22 = arith.constant 0 : index
      %34 = vector.load %arg4[%c0_21, %c0_22] : memref<2x1xf32, #tpu.memory_space<vmem>>, vector<2x1xf32>
      tpu.vector_store %arg4[%c0_21, %c0_22], %33 {strides = array<i32>} : memref<2x1xf32, #tpu.memory_space<vmem>>, vector<2x1xf32>,
    } else {
    }
    return
  }
  func.func @transform_0(%arg0: i32, %arg1: i32) -> (i32, i32, i32) {
    %c0_i32 = arith.constant 0 : i32
    %c0_i32_0 = arith.constant 0 : i32
    return %arg0, %c0_i32, %arg1 : i32, i32, i32
  }
  func.func @transform_1(%arg0: i32, %arg1: i32) -> (i32, i32, i32) {
    %c0_i32 = arith.constant 0 : i32
    %c0_i32_0 = arith.constant 0 : i32
    return %arg0, %c0_i32, %arg1 : i32, i32, i32
  }
  func.func @transform_2(%arg0: i32, %arg1: i32) -> (i32, i32) {
    %c0_i32 = arith.constant 0 : i32
    %c0_i32_0 = arith.constant 0 : i32
    return %arg0, %c0_i32 : i32, i32
  }
}

</mosaic_0001>

<bundles_post_ra>
// kernel: tpu_custom_call.1
= control target key start
LH: loop header
LB: loop body
LE: loop exit
PB: predicated region body
PF: predicated region fallthrough
CT: control target
= control target key end

     0   :  { %7 = vsyncpa [#allocation4], 0  ;;  %s167_s9 = smov [#allocation3]   ;;  %s216_s0 = inlined_call_operand.hbm [shape: f32[2,4,16], index: 0, kind: input, shape index: {}]   ;;  %s217_s1 = inlined_call_operand.vmem [shape: s32[2,1,16], index: 1, kind: input, shape index: {}]   ;;  %s218_s2 = inlined_call_operand.vmem [shape: f32[2,1], index: 2, kind: output, shape index: {}]  }
   0x1   :  { %s13_s10 = sshll.u32 %s167_s9, 4  ;;  %s143_s13 = scalar_lea.hbm %s216_s0, 128  ;;  %s14_s10 = int_to_ptr.vmem [resolvable:$true] %s13_s10 }
   0x2   :  { %p144_p0 = scmp.ne.s32.totalorder %s216_s0, %s143_s13  ;;  %p147_p1 = scmp.lt.u32.totalorder %s143_s13, %s216_s0 }
   0x4   :  { %p149_p2 = pnand %p147_p1, %p144_p0 }
   0x6   :  { %152 = shalt.err (!%p149_p2)
}
   0x7   :  { %s153_s18 = scalar_lea.vmem %s14_s10, 128  ;;  %p158_p4 = scmp.lt.s32.totalorder %s14_s10, %s14_s10 }
   0x8   :  { %p154_p3 = scmp.ne.s32.totalorder %s14_s10, %s153_s18  ;;  %p159_p5 = scmp.lt.s32.totalorder %s153_s18, %s153_s18 }
   0xa   :  { %p160_p6 = por %p159_p5, %p158_p4 }
   0xc   :  { %p161_p7 = pnand %p160_p6, %p154_p3 }
   0xe   :  { %164 = shalt.err (!%p161_p7)
}
   0xf   :  { %s168_s19 = smov 64   ;;  %s169_s20 = smov 4  }
  0x10   :  { %19 = dma.hbm_to_vmem [thread:$0]  %s216_s0, 128, %s14_s10, [#allocation4], %s168_s19, %s168_s19, %s169_s20  }
  0x11   :  { %165 = dma.done.wait [#allocation4], 128  }
  0x12   :  { %166 = vsyncadd [#allocation4], 4294967168  ;;  %vm29_vm0 = vcmask 123904   ;;  %v170_v0 = vmov 0.0   ;;  %vm35_vm1 = vcmask 125952   ;;  %v70_v21 = vlaneseq }
  0x13   :  { %30 = vst.msk [vmem:[#allocation2] sm:$0x3] %vm29_vm0, %v170_v0  ;;  %v31_v1 = vld [vmem:[#allocation3] sm:$0xf]  ;;  %v32_v2 = vld [vmem:[#allocation3 + $0x4] sm:$0xf] }
  0x14   :  { %v36_v3 = vsel %vm35_vm1, %v31_v1, -inf  ;;  %v43_v4 = vsel %vm35_vm1, %v32_v2, -inf  ;;  %v71_v22 = vshrl.u32 %v70_v21, 7  ;;  %v129_v23 = vld [vmem:[%s217_s1] ss:$0 sm:$0xff]  ;;  %vm105_vm4 = vcmask 1041409  }
  0x15   :  { %v37_v5 = vrot.slane %v36_v3, 4  ;;  %v44_v6 = vrot.slane %v43_v4, 4  ;;  %v130_v24 = vld [vmem:[%s217_s1 + $0x1] ss:$0 sm:$0xff]  ;;  %vm122_vm5 = vcmask 1024  }
  0x16   :  { %vm80_vm2 = vcmp.eq.s32.totalorder %v71_v22, %v129_v23  ;;  %vm81_vm3 = vcmp.eq.s32.totalorder %v71_v22, %v130_v24 }
  0x17   :  { %v38_v7 = vmax.f32 %v36_v3, %v37_v5  ;;  %v45_v8 = vmax.f32 %v43_v4, %v44_v6 }
  0x19   :  { %v39_v9 = vrot.slane %v38_v7, 2  ;;  %v46_v10 = vrot.slane %v45_v8, 2 }
  0x1a   :  { %v98_v60 = vld [vmem:[#allocation2] sm:$0x3] }
  0x1b   :  { %v40_v11 = vmax.f32 %v38_v7, %v39_v9  ;;  %v47_v12 = vmax.f32 %v45_v8, %v46_v10 }
  0x1d   :  { %v41_v13 = vrot.slane %v40_v11, 1  ;;  %v48_v14 = vrot.slane %v47_v12, 1 }
  0x1f   :  { %v42_v15 = vmax.f32 %v40_v11, %v41_v13  ;;  %v49_v16 = vmax.f32 %v47_v12, %v48_v14 }
  0x21   :  { %v50_v17 = vsub.f32 %v31_v1, %v42_v15  ;;  %v51_v18 = vsub.f32 %v32_v2, %v49_v16 }
  0x23   :  { %v52_v19 = vmul.f32 1.442695, %v50_v17  ;;  %v54_v20 = vmul.f32 1.442695, %v51_v18 }
  0x25   :  { %135 = vpow2.f32 %v52_v19 }
  0x26   :  { %137 = vpow2.f32 %v54_v20 }
  0x2f   :  { %v136_v25 = vpop.eup %135 }
  0x30   :  { %v138_v26 = vpop.eup %137  ;;  %v56_v27 = vsel %vm35_vm1, %v136_v25, 0.0  ;;  %v82_v28 = vsel %vm80_vm2, %v136_v25, 0.0 }
  0x31   :  { %v57_v29 = vrot.slane %v56_v27, 4  ;;  %v63_v30 = vsel %vm35_vm1, %v138_v26, 0.0  ;;  %v83_v31 = vsel %vm81_vm3, %v138_v26, 0.0  ;;  %v84_v32 = vsel %vm35_vm1, %v82_v28, 0.0 }
  0x32   :  { %v64_v33 = vrot.slane %v63_v30, 4  ;;  %v85_v34 = vrot.slane %v84_v32, 4  ;;  %v91_v35 = vsel %vm35_vm1, %v83_v31, 0.0 }
  0x33   :  { %v58_v36 = vadd.f32 %v57_v29, %v56_v27  ;;  %v92_v37 = vrot.slane %v91_v35, 4 }
  0x34   :  { %v65_v38 = vadd.f32 %v64_v33, %v63_v30  ;;  %v86_v39 = vadd.f32 %v85_v34, %v84_v32 }
  0x35   :  { %v59_v40 = vrot.slane %v58_v36, 2  ;;  %v93_v41 = vadd.f32 %v92_v37, %v91_v35 }
  0x36   :  { %v66_v42 = vrot.slane %v65_v38, 2  ;;  %v87_v45 = vrot.slane %v86_v39, 2 }
  0x37   :  { %v60_v43 = vadd.f32 %v59_v40, %v58_v36  ;;  %v94_v47 = vrot.slane %v93_v41, 2 }
  0x38   :  { %v67_v44 = vadd.f32 %v66_v42, %v65_v38  ;;  %v88_v51 = vadd.f32 %v87_v45, %v86_v39 }
  0x39   :  { %v61_v46 = vrot.slane %v60_v43, 1  ;;  %v95_v52 = vadd.f32 %v94_v47, %v93_v41 }
  0x3a   :  { %v68_v48 = vrot.slane %v67_v44, 1  ;;  %v89_v53 = vrot.slane %v88_v51, 1 }
  0x3b   :  { %v62_v49 = vadd.f32 %v61_v46, %v60_v43  ;;  %v96_v54 = vrot.slane %v95_v52, 1 }
  0x3c   :  { %v69_v50 = vadd.f32 %v68_v48, %v67_v44  ;;  %v90_v55 = vadd.f32 %v89_v53, %v88_v51 }
  0x3d   :  { %139 = vrcp.f32 %v62_v49  ;;  %v97_v56 = vadd.f32 %v96_v54, %v95_v52 }
  0x3e   :  { %141 = vrcp.f32 %v69_v50 }
  0x47   :  { %v140_v57 = vpop.eup %139 }
  0x48   :  { %v142_v58 = vpop.eup %141  ;;  %v101_v59 = vmul.f32 %v140_v57, %v90_v55 }
  0x49   :  { %v102_v61 = vmul.f32 %v142_v58, %v97_v56 }
  0x4b   :  { %v106_v62 = vsel %vm105_vm4, %v102_v61, %v101_v59 }
  0x4c   :  { %v108_v63 = vadd.f32 %v106_v62, %v98_v60 }
  0x4e   :  { %110 = vst.msk [vmem:[#allocation2] sm:$0x3] %vm29_vm0, %v108_v63 }
  0x55   :  { %v114_v0 = vld [vmem:[#allocation2] sm:$0x3] }
  0x56   :  { %v115_v1 = vsel %vm29_vm0, %v114_v0, 0.0 }
  0x57   :  { %116 = vadd.xlane.f32.xlu0 %v115_v1 }
  0xe4   :  { %v117_v2 = vpop.xlane.xlu0 %116 }
  0xe5   :  { %v118_v3 = vmul.f32 2.0, %v117_v2 }
  0xe7   :  { %v120_v4 = vmul.f32 0.031249903, %v118_v3 }
  0xe9   :  { %v121_v5 = vsub.f32 1.0, %v120_v4 }
  0xeb   :  { %123 = vst.msk [vmem:[%s218_s2] sm:$0x3] %vm122_vm5, %v121_v5 }
  0xec   :  { %128 = vsyncpa [#allocation4], 1 }

</bundles_post_ra>
